<compile_context>
chip_gen: v6e
topology: v6e:2x2x1
jax: 0.10.0
libtpu: 0.0.40
codegen_flags: <defaults>
</compile_context>

<pallas_src>
import math

import jax
import jax.numpy as jnp
from jax.experimental import pallas as pl
from jax.experimental.pallas import tpu as pltpu

_GELU_C = math.sqrt(2.0 / math.pi)


# --------------------------------------------------------------------------- #
# Kernels
# --------------------------------------------------------------------------- #
def _gelu_tanh(h):
    # tanh-GELU exactly as written in the torch module (f32 math; tanh -> EUP).
    return 0.5 * h * (1.0 + jnp.tanh(_GELU_C * (h + 0.044715 * (h * h * h))))


def _ffn_kernel_resident(x_ref, w1_ref, b1_ref, w2_ref, b2_ref, o_ref):
    """Weights fully VMEM-resident; grid = (M tiles,).  W1/W2 DMA'd once."""
    h = jnp.dot(x_ref[...], w1_ref[...], preferred_element_type=jnp.float32)
    h = h + b1_ref[...].astype(jnp.float32)
    act = _gelu_tanh(h)
    # dropout == identity (eval mode)
    # NOTE: act is downcast to the weight dtype (bf16) before the second MXU
    # pass; matches mixed-precision FFNs but differs slightly from pure f32.
    out = jnp.dot(act.astype(w2_ref.dtype), w2_ref[...],
                  preferred_element_type=jnp.float32)
    o_ref[...] = (out + b2_ref[...].astype(jnp.float32)).astype(o_ref.dtype)
    # TODO(synk): on v7x an in-body fori_loop over 4H chunks could keep the
    # accumulation in the MXU result buffer and shrink the f32 intermediate.


def _ffn_kernel_streamed(x_ref, w1_ref, b1_ref, w2_ref, b2_ref, o_ref, acc_ref):
    """4H tiled as trailing 'arbitrary' grid axis; W1/W2 streamed in chunks."""
    k = pl.program_id(1)

    @pl.when(k == 0)
    def _():
        # Seed the accumulator with the output bias: removes the zero-fill and
        # the epilogue broadcast-add (one fewer (tm, H) store per M tile).
        acc_ref[...] = jnp.broadcast_to(
            b2_ref[...].astype(jnp.float32), acc_ref.shape)

    h = jnp.dot(x_ref[...], w1_ref[...], preferred_element_type=jnp.float32)
    h = h + b1_ref[...].astype(jnp.float32)
    act = _gelu_tanh(h)
    # dropout == identity (eval mode)
    acc_ref[...] += jnp.dot(act.astype(w2_ref.dtype), w2_ref[...],
                            preferred_element_type=jnp.float32)

    @pl.when(k == pl.num_programs(1) - 1)
    def _():
        o_ref[...] = acc_ref[...].astype(o_ref.dtype)


# --------------------------------------------------------------------------- #
# Tiling / VMEM budgeting helpers
# --------------------------------------------------------------------------- #
def _round_up(x, m):
    return ((x + m - 1) // m) * m


def _vmem_capacity_bytes():
    try:
        return int(pltpu.get_tpu_info().vmem_capacity_bytes)
    except Exception:
        return 64 * (1 << 20)  # conservative: v7x per-TensorCore VMEM


def _streamed_vmem_bytes(tm, tk, H, H4, xb, wb, ob):
    blocks = 2 * (tm * H * xb          # x tile (double-buffered)
                  + H * tk * wb        # W1 column chunk
                  + tk * wb            # b1 chunk
                  + tk * H * wb        # W2 row chunk
                  + H * wb             # b2
                  + tm * H * ob)       # output tile
    acc = tm * H * 4                   # f32 accumulator scratch
    live = 3 * tm * tk * 4             # f32 h/act intermediates + GELU temps
    return blocks + acc + live


def _resident_vmem_bytes(tm, H, H4, xb, wb, ob):
    blocks = 2 * (tm * H * xb + tm * H * ob
                  + H * H4 * wb + H4 * wb + H4 * H * wb + H * wb)
    live = 3 * tm * H4 * 4             # f32 h/act intermediates
    return blocks + live


def _choose_tile_m(M_aligned, align, target):
    """Aligned M tile; prefers a divisor of the aligned M (skips pad+slice)."""
    target = max(align, (min(target, M_aligned) // align) * align)
    if M_aligned <= target:
        return M_aligned
    t = target
    while t >= max(align, target // 2):
        if M_aligned % t == 0:
            return t
        t -= align
    return target


# --------------------------------------------------------------------------- #
# Public wrapper
# --------------------------------------------------------------------------- #
def positionwise_ffn(hidden, w1, b1, w2, b2, *, tile_m=None, tile_k=None,
                     weights_resident=None, vmem_limit_bytes=None):
    """hidden: [B, S, H];  w1: [H, 4H];  b1: [4H];  w2: [4H, H];  b2: [H]."""
    B, S, H = hidden.shape
    H4 = w1.shape[1]
    assert w1.shape == (H, H4) and w2.shape == (H4, H)
    M = B * S

    xb = jnp.dtype(hidden.dtype).itemsize
    wb = jnp.dtype(w1.dtype).itemsize
    ob = xb
    # sublane packing tile: 8 rows for 32-bit, 16 for bf16, 32 for 8-bit
    align = max(8, 32 // min(xb, 4))

    capacity = _vmem_capacity_bytes()
    budget = int(capacity * 0.7)              # headroom for compiler scratch
    big_vmem = capacity >= 100 * (1 << 20)    # v5e/v6e: 128 MiB; v7x: 64 MiB

    M_aligned = _round_up(M, align)

    # --- M tiling: weight streaming is amortized over tile_m rows, so make it
    #     as big as VMEM allows (v6e needs ~650 rows to stay MXU-bound in bf16).
    tm_target = tile_m if tile_m is not None else (1024 if big_vmem else 640)
    tm = _choose_tile_m(M_aligned, align, tm_target)
    # keep >=2 M tiles so the "parallel" axis can shard across both v7x cores
    if tm >= M_aligned and M_aligned >= 512:
        tm = _round_up(pl.cdiv(M_aligned, 2), align)

    tm_cands = []
    t = tm
    while True:
        tm_cands.append(t)
        if t <= align:
            break
        t = max(align, ((t // 2) // align) * align)

    # --- 4H chunk candidates (largest first: fewer acc read-modify-writes)
    if tile_k is not None:
        assert H4 % tile_k == 0
        tks = [tile_k]
    else:
        tks = [H4] if H4 <= 1024 else []
        tks += [c for c in (512, 256, 128) if c < H4 and H4 % c == 0]
        if not tks:
            # TODO(synk): 4H not a multiple of 128 -> fall back to one full slab
            tks = [H4]

    # --- weights-resident path: W1/W2 DMA'd once for the whole kernel --------
    resident_tm = None
    if weights_resident is not False:
        for t in tm_cands:
            if _resident_vmem_bytes(t, H, H4, xb, wb, ob) <= budget:
                resident_tm = t
                break
        if weights_resident is True and resident_tm is None:
            resident_tm = tm_cands[-1]
        if (weights_resident is None and resident_tm is not None
                and resident_tm < min(tm, 128)):
            resident_tm = None        # weights barely fit; big-tile streaming wins

    if resident_tm is not None:
        tm = resident_tm
        tk = None
        footprint = _resident_vmem_bytes(tm, H, H4, xb, wb, ob)
    else:
        choice = None
        for t in tm_cands:
            for c in tks:
                if _streamed_vmem_bytes(t, c, H, H4, xb, wb, ob) <= budget:
                    choice = (t, c)
                    break
            if choice is not None:
                break
        if choice is None:
            choice = (tm_cands[-1], tks[-1])
        tm, tk = choice
        footprint = _streamed_vmem_bytes(tm, tk, H, H4, xb, wb, ob)

    if vmem_limit_bytes is None:
        vmem_limit_bytes = int(min(capacity,
                                   max(32 * (1 << 20),
                                       footprint * 1.3 + (4 << 20))))

    # --- pad M to a tile multiple (padded rows compute garbage, sliced off) --
    Mp = pl.cdiv(M, tm) * tm
    x2d = hidden.reshape(M, H)
    if Mp != M:
        x2d = jnp.pad(x2d, ((0, Mp - M), (0, 0)))
    b1_2d = b1.reshape(1, H4)
    b2_2d = b2.reshape(1, H)

    if resident_tm is not None:
        grid_spec = pltpu.PrefetchScalarGridSpec(
            num_scalar_prefetch=0,
            grid=(Mp // tm,),
            in_specs=[
                pl.BlockSpec((tm, H), lambda i: (i, 0)),    # x tile
                pl.BlockSpec((H, H4), lambda i: (0, 0)),    # W1 (resident)
                pl.BlockSpec((1, H4), lambda i: (0, 0)),    # b1
                pl.BlockSpec((H4, H), lambda i: (0, 0)),    # W2 (resident)
                pl.BlockSpec((1, H), lambda i: (0, 0)),     # b2
            ],
            out_specs=pl.BlockSpec((tm, H), lambda i: (i, 0)),
            scratch_shapes=[],
        )
        kernel = _ffn_kernel_resident
        dim_sem = ("parallel",)
    else:
        grid_spec = pltpu.PrefetchScalarGridSpec(
            num_scalar_prefetch=0,
            grid=(Mp // tm, H4 // tk),
            in_specs=[
                pl.BlockSpec((tm, H), lambda i, k: (i, 0)),  # x tile
                pl.BlockSpec((H, tk), lambda i, k: (0, k)),  # W1 column chunk
                pl.BlockSpec((1, tk), lambda i, k: (0, k)),  # b1 chunk
                pl.BlockSpec((tk, H), lambda i, k: (k, 0)),  # W2 row chunk
                pl.BlockSpec((1, H), lambda i, k: (0, 0)),   # b2
            ],
            out_specs=pl.BlockSpec((tm, H), lambda i, k: (i, 0)),
            scratch_shapes=[pltpu.VMEM((tm, H), jnp.float32)],
        )
        kernel = _ffn_kernel_streamed
        dim_sem = ("parallel", "arbitrary")

    out2d = pl.pallas_call(
        kernel,
        out_shape=jax.ShapeDtypeStruct((Mp, H), hidden.dtype),
        grid_spec=grid_spec,
        compiler_params=pltpu.CompilerParams(
            dimension_semantics=dim_sem,
            vmem_limit_bytes=vmem_limit_bytes,
        ),
    )(x2d, w1, b1_2d, w2, b2_2d)

    if Mp != M:
        out2d = out2d[:M]
    return out2d.reshape(B, S, H)


# --------------------------------------------------------------------------- #
# Params / reference
# --------------------------------------------------------------------------- #
def init_params(key, hidden_size, dtype=jnp.bfloat16):
    """Deterministic Xavier-normal init matching nn.init.xavier_normal_."""
    h4 = hidden_size * 4
    k1, k2 = jax.random.split(key)
    std1 = math.sqrt(2.0 / (hidden_size + h4))
    std2 = math.sqrt(2.0 / (h4 + hidden_size))
    # torch Linear weights are [out, in]; store transposed [in, out] for kernel
    w1 = (jax.random.normal(k1, (hidden_size, h4)) * std1).astype(dtype)
    w2 = (jax.random.normal(k2, (h4, hidden_size)) * std2).astype(dtype)
    # nn.Linear biases default to uniform init; zeros are fine for a synthetic kernel
    b1 = jnp.zeros((h4,), dtype)
    b2 = jnp.zeros((hidden_size,), dtype)
    return w1, b1, w2, b2


def _reference(hidden, w1, b1, w2, b2):
    x = hidden.astype(jnp.float32)
    h = x @ w1.astype(jnp.float32) + b1.astype(jnp.float32)
    act = 0.5 * h * (1.0 + jnp.tanh(_GELU_C * (h + 0.044715 * h ** 3)))
    return act @ w2.astype(jnp.float32) + b2.astype(jnp.float32)


if __name__ == "__main__":
    key = jax.random.PRNGKey(0)
    k1, k2, k3, k4 = jax.random.split(key, 4)

    # --- test 1: bf16 operands, weights-resident path (auto-selected) -------
    B, S, H = 2, 8, 32
    hidden = jax.random.normal(k1, (B, S, H)).astype(jnp.bfloat16)
    w1, b1, w2, b2 = init_params(k2, H, dtype=jnp.bfloat16)
    out = jax.block_until_ready(positionwise_ffn(hidden, w1, b1, w2, b2))
    ref = _reference(hidden, w1, b1, w2, b2)
    assert out.shape == (B, S, H)
    assert jnp.allclose(out.astype(jnp.float32), ref, atol=3e-2, rtol=3e-2)

    # --- test 2: bf16, streamed path with a real 4H reduction (grid k = 2) --
    B2, S2, H2 = 2, 24, 64
    hidden2 = jax.random.normal(k3, (B2, S2, H2)).astype(jnp.bfloat16)
    w1b, b1b, w2b, b2b = init_params(k4, H2, dtype=jnp.bfloat16)
    out2 = jax.block_until_ready(
        positionwise_ffn(hidden2, w1b, b1b, w2b, b2b,
                         weights_resident=False, tile_k=128))
    ref2 = _reference(hidden2, w1b, b1b, w2b, b2b)
    assert out2.shape == (B2, S2, H2)
    assert jnp.allclose(out2.astype(jnp.float32), ref2, atol=3e-2, rtol=3e-2)

    # --- test 3: f32 path, tight tolerance -----------------------------------
    hidden3 = jax.random.normal(k1, (B, S, H), dtype=jnp.float32)
    w1c, b1c, w2c, b2c = init_params(k2, H, dtype=jnp.float32)
    out3 = jax.block_until_ready(positionwise_ffn(hidden3, w1c, b1c, w2c, b2c))
    ref3 = _reference(hidden3, w1c, b1c, w2c, b2c)
    assert jnp.allclose(out3, ref3.astype(out3.dtype), atol=2e-4, rtol=2e-4)

    print("KERNEL_OK")
</pallas_src>

<mosaic_0001>
module attributes {stable_mosaic.version = 11 : i64} {
  func.func @_ffn_kernel_resident(%arg0: i32, %arg1: memref<16x32xbf16, #tpu.memory_space<vmem>>, %arg2: memref<32x128xbf16, #tpu.memory_space<vmem>>, %arg3: memref<1x128xbf16, #tpu.memory_space<vmem>>, %arg4: memref<128x32xbf16, #tpu.memory_space<vmem>>, %arg5: memref<1x32xbf16, #tpu.memory_space<vmem>>, %arg6: memref<16x32xbf16, #tpu.memory_space<vmem>>) attributes {dimension_semantics = [#tpu.dimension_semantics<parallel>], iteration_bounds = array<i64: 1>, scalar_prefetch = 0 : i64, scratch_operands = 0 : i64, tpu.core_type = #tpu.core_type<tc>, window_params = [{transform_indices = @transform_0, window_bounds = array<i64: 16, 32>}, {pipeline_mode = #tpu.pipeline_mode<synchronous>, transform_indices = @transform_1, window_bounds = array<i64: 32, 128>}, {pipeline_mode = #tpu.pipeline_mode<synchronous>, transform_indices = @transform_2, window_bounds = array<i64: 1, 128>}, {pipeline_mode = #tpu.pipeline_mode<synchronous>, transform_indices = @transform_3, window_bounds = array<i64: 128, 32>}, {pipeline_mode = #tpu.pipeline_mode<synchronous>, transform_indices = @transform_4, window_bounds = array<i64: 1, 32>}, {transform_indices = @transform_5, window_bounds = array<i64: 16, 32>}]} {
    %c0 = arith.constant 0 : index
    %c0_0 = arith.constant 0 : index
    %0 = vector.load %arg1[%c0, %c0_0] : memref<16x32xbf16, #tpu.memory_space<vmem>>, vector<16x32xbf16>
    %c0_1 = arith.constant 0 : index
    %c0_2 = arith.constant 0 : index
    %1 = vector.load %arg2[%c0_1, %c0_2] : memref<32x128xbf16, #tpu.memory_space<vmem>>, vector<32x128xbf16>
    %cst = arith.constant dense<0.000000e+00> : vector<16x128xf32>
    %2 = tpu.matmul %0, %1, %cst {dimension_numbers = #tpu.dot_dimension_numbers<[1], [0], [0], [1], [0, 0, 1, 1], [], []>} : vector<16x32xbf16>, vector<32x128xbf16>, vector<16x128xf32> -> vector<16x128xf32>
    %c0_3 = arith.constant 0 : index
    %c0_4 = arith.constant 0 : index
    %3 = vector.load %arg3[%c0_3, %c0_4] : memref<1x128xbf16, #tpu.memory_space<vmem>>, vector<1x128xbf16>
    %4 = arith.extf %3 : vector<1x128xbf16> to vector<1x128xf32>
    %5 = vector.broadcast %4 : vector<1x128xf32> to vector<16x128xf32>
    %6 = arith.addf %2, %5 : vector<16x128xf32>
    %cst_5 = arith.constant 5.000000e-01 : f32
    %7 = vector.broadcast %cst_5 : f32 to vector<16x128xf32>
    %8 = arith.mulf %7, %6 : vector<16x128xf32>
    %9 = arith.mulf %6, %6 : vector<16x128xf32>
    %10 = arith.mulf %9, %6 : vector<16x128xf32>
    %cst_6 = arith.constant 4.471500e-02 : f32
    %11 = vector.broadcast %cst_6 : f32 to vector<16x128xf32>
    %12 = arith.mulf %11, %10 : vector<16x128xf32>
    %13 = arith.addf %6, %12 : vector<16x128xf32>
    %cst_7 = arith.constant 0.797884583 : f32
    %14 = vector.broadcast %cst_7 : f32 to vector<16x128xf32>
    %15 = arith.mulf %14, %13 : vector<16x128xf32>
    %16 = math.tanh %15 : vector<16x128xf32>
    %cst_8 = arith.constant 1.000000e+00 : f32
    %17 = vector.broadcast %cst_8 : f32 to vector<16x128xf32>
    %18 = arith.addf %17, %16 : vector<16x128xf32>
    %19 = arith.mulf %8, %18 : vector<16x128xf32>
    %20 = arith.truncf %19 : vector<16x128xf32> to vector<16x128xbf16>
    %c0_9 = arith.constant 0 : index
    %c0_10 = arith.constant 0 : index
    %21 = vector.load %arg4[%c0_9, %c0_10] : memref<128x32xbf16, #tpu.memory_space<vmem>>, vector<128x32xbf16>
    %cst_11 = arith.constant dense<0.000000e+00> : vector<16x32xf32>
    %22 = tpu.matmul %20, %21, %cst_11 {dimension_numbers = #tpu.dot_dimension_numbers<[1], [0], [0], [1], [0, 0, 1, 1], [], []>} : vector<16x128xbf16>, vector<128x32xbf16>, vector<16x32xf32> -> vector<16x32xf32>
    %c0_12 = arith.constant 0 : index
    %c0_13 = arith.constant 0 : index
    %23 = vector.load %arg5[%c0_12, %c0_13] : memref<1x32xbf16, #tpu.memory_space<vmem>>, vector<1x32xbf16>
    %24 = arith.extf %23 : vector<1x32xbf16> to vector<1x32xf32>
    %25 = vector.broadcast %24 : vector<1x32xf32> to vector<16x32xf32>
    %26 = arith.addf %22, %25 : vector<16x32xf32>
    %27 = arith.truncf %26 : vector<16x32xf32> to vector<16x32xbf16>
    %c0_14 = arith.constant 0 : index
    %c0_15 = arith.constant 0 : index
    %28 = vector.load %arg6[%c0_14, %c0_15] : memref<16x32xbf16, #tpu.memory_space<vmem>>, vector<16x32xbf16>
    tpu.vector_store %arg6[%c0_14, %c0_15], %27 {strides = array<i32>} : memref<16x32xbf16, #tpu.memory_space<vmem>>, vector<16x32xbf16>,
    return
  }
  func.func @transform_0(%arg0: i32) -> (i32, i32) {
    %c0_i32 = arith.constant 0 : i32
    %c0_i32_0 = arith.constant 0 : i32
    return %arg0, %c0_i32 : i32, i32
  }
  func.func @transform_1(%arg0: i32) -> (i32, i32) {
    %c0_i32 = arith.constant 0 : i32
    %c0_i32_0 = arith.constant 0 : i32
    %c0_i32_1 = arith.constant 0 : i32
    return %c0_i32, %c0_i32_0 : i32, i32
  }
  func.func @transform_2(%arg0: i32) -> (i32, i32) {
    %c0_i32 = arith.constant 0 : i32
    %c0_i32_0 = arith.constant 0 : i32
    %c0_i32_1 = arith.constant 0 : i32
    return %c0_i32, %c0_i32_0 : i32, i32
  }
  func.func @transform_3(%arg0: i32) -> (i32, i32) {
    %c0_i32 = arith.constant 0 : i32
    %c0_i32_0 = arith.constant 0 : i32
    %c0_i32_1 = arith.constant 0 : i32
    return %c0_i32, %c0_i32_0 : i32, i32
  }
  func.func @transform_4(%arg0: i32) -> (i32, i32) {
    %c0_i32 = arith.constant 0 : i32
    %c0_i32_0 = arith.constant 0 : i32
    %c0_i32_1 = arith.constant 0 : i32
    return %c0_i32, %c0_i32_0 : i32, i32
  }
  func.func @transform_5(%arg0: i32) -> (i32, i32) {
    %c0_i32 = arith.constant 0 : i32
    %c0_i32_0 = arith.constant 0 : i32
    return %arg0, %c0_i32 : i32, i32
  }
}

</mosaic_0001>

<bundles_post_ra>
// kernel: tpu_custom_call.1
= control target key start
LH: loop header
LB: loop body
LE: loop exit
PB: predicated region body
PF: predicated region fallthrough
CT: control target
= control target key end

     0   :  { %v351_v1 = vmov 0.0   ;;  %vm352_vm0 = vmmov 0   ;;  %vm51_vm1 = vcmask 261120   ;;  %s428_s0 = inlined_call_operand.vmem [shape: bf16[16,32], index: 0, kind: input, shape index: {}]   ;;  %s429_s1 = inlined_call_operand.vmem [shape: bf16[32,128], index: 1, kind: input, shape index: {}]   ;;  %s430_s2 = inlined_call_operand.vmem [shape: bf16[1,128], index: 2, kind: input, shape index: {}]   ;;  %s431_s3 = inlined_call_operand.vmem [shape: bf16[128,32], index: 3, kind: input, shape index: {}]   ;;  %s432_s4 = inlined_call_operand.vmem [shape: bf16[1,32], index: 4, kind: input, shape index: {}]   ;;  %s433_s5 = inlined_call_operand.hbm [shape: bf16[16,32], index: 5, kind: output, shape index: {}]  }
   0x1   :  { %v314_v0 = vld [vmem:[%s429_s1 + $0x8] sm:$0xff]   ;;  %281 = vmatprep.subr.bf16.mxu0 %v351_v1  ;;  %289 = vmatprep.subr.bf16.mxu1 %v351_v1  ;;  %v315_v2 = vld [vmem:[%s429_s1] sm:$0xff]  }
   0x2   :  { %282 = vmatpush3.bf16.msra.mxu0 %v314_v0  ;;  %285 = vmatprep.mubr.msk.bf16.mxu0 %vm352_vm0, %v351_v1  ;;  %v316_v3 = vld [vmem:[%s428_s0] sm:$0xff]  }
   0x3   :  { %283 = vmatprep.subr.bf16.mxu0 %v351_v1  ;;  %305 = vmatprep.mubr.msk.bf16.mxu1 %vm352_vm0, %v351_v1 }
   0x6   :  { %284 = vmatpush3.bf16.msra.mxu0 %v315_v2 }
   0x9   :  { %286 = vmatmul.mubr.msk.bf16.vlgmr.msra.gmra.mxu0 %vm51_vm1, %v316_v3 }
   0xa   :  { %10 = vsyncpa [#allocation3], 0  ;;  %v317_v4 = vld [vmem:[%s431_s3 + $0x38] sm:$0xff]   ;;  %v318_v5 = vld [vmem:[%s431_s3 + $0x30] sm:$0xff]   ;;  %v30_v12 = vlaneseq  ;;  %vm234_vm2 = vcmask 257024   ;;  %s353_s15 = smov [#allocation2]  }
   0xb   :  { %290 = vmatpush3.bf16.msra.mxu1 %v317_v4  ;;  %v319_v6 = vld [vmem:[%s431_s3 + $0x28] sm:$0xff]   ;;  %v320_v7 = vld [vmem:[%s431_s3 + $0x20] sm:$0xff]   ;;  %v321_v8 = vld [vmem:[%s431_s3 + $0x18] sm:$0xff]   ;;  %s242_s16 = sshll.u32 %s353_s15, 4  ;;  %s243_s16 = int_to_ptr.vmem [resolvable:$true] %s242_s16 }
   0xc   :  { %291 = vmatprep.subr.bf16.mxu1 %v351_v1  ;;  %v322_v9 = vld [vmem:[%s431_s3 + $0x10] sm:$0xff]   ;;  %v323_v10 = vld [vmem:[%s431_s3 + $0x8] sm:$0xff]   ;;  %v324_v11 = vld [vmem:[%s431_s3] sm:$0xff]   ;;  %v31_v13 = vshrl.u32 %v30_v12, 7  ;;  %s329_s17 = scalar_lea.vmem %s243_s16, 128  ;;  %p334_p1 = scmp.lt.s32.totalorder %s243_s16, %s243_s16 }
   0xd   :  { %v28_v14 = vld [vmem:[%s430_s2] sm:$0x1]  ;;  %p330_p0 = scmp.ne.s32.totalorder %s243_s16, %s329_s17  ;;  %p335_p2 = scmp.lt.s32.totalorder %s329_s17, %s329_s17 }
   0xe   :  { %v29_v15 = vunpack.c.l.bf16 %v28_v14  ;;  %v32_v16 = vsub.s32 0, %v31_v13  ;;  %v131_v43 = vld [vmem:[%s432_s4] sm:$0x1] }
   0xf   :  { %292 = vmatpush3.bf16.msra.mxu1 %v318_v5  ;;  %v132_v44 = vunpack.c.l.bf16 %v131_v43  ;;  %p336_p3 = por %p335_p2, %p334_p1 }
  0x10   :  { %293 = vmatprep.subr.bf16.mxu1 %v351_v1  ;;  %v33_v17 = vrot.slane %v29_v15, %v32_v16 }
  0x11   :  { %v136_v45 = vrot.slane %v132_v44, %v32_v16  ;;  %p337_p4 = pnand %p336_p3, %p330_p0 }
  0x13   :  { %294 = vmatpush3.bf16.msra.mxu1 %v319_v6 }
  0x14   :  { %295 = vmatprep.subr.bf16.mxu1 %v351_v1 }
  0x17   :  { %296 = vmatpush3.bf16.msra.mxu1 %v320_v7 }
  0x18   :  { %297 = vmatprep.subr.bf16.mxu1 %v351_v1 }
  0x1b   :  { %298 = vmatpush3.bf16.msra.mxu1 %v321_v8 }
  0x1c   :  { %299 = vmatprep.subr.bf16.mxu1 %v351_v1 }
  0x1f   :  { %300 = vmatpush3.bf16.msra.mxu1 %v322_v9 }
  0x20   :  { %301 = vmatprep.subr.bf16.mxu1 %v351_v1 }
  0x23   :  { %302 = vmatpush3.bf16.msra.mxu1 %v323_v10 }
  0x24   :  { %303 = vmatprep.subr.bf16.mxu1 %v351_v1 }
  0x27   :  { %304 = vmatpush3.bf16.msra.mxu1 %v324_v11 }
  0xc9   :  { %v89_v18 = vpop.f32.mrf.mxu0 }
  0xca   :  { %v90_v19 = vadd.f32 %v89_v18, %v33_v17 }
  0xcb   :  { %v287_v20 = vpop.f32.mrf.mxu0 }
  0xcc   :  { %v98_v21 = vmul.f32 %v90_v19, %v90_v19  ;;  %v96_v37 = vmul.f32 0.5, %v90_v19 }
  0xcd   :  { %v92_v22 = vpop.f32.mrf.mxu0 }
  0xce   :  { %v100_v23 = vmul.f32 %v98_v21, %v90_v19  ;;  %v93_v24 = vadd.f32 %v92_v22, %v33_v17 }
  0xcf   :  { %v288_v25 = vpop.f32.mrf.mxu0 }
  0xd0   :  { %v102_v26 = vmul.f32 0.044715, %v100_v23  ;;  %v99_v27 = vmul.f32 %v93_v24, %v93_v24  ;;  %v97_v38 = vmul.f32 0.5, %v93_v24 }
  0xd2   :  { %v104_v28 = vadd.f32 %v102_v26, %v90_v19  ;;  %v101_v29 = vmul.f32 %v99_v27, %v93_v24 }
  0xd4   :  { %v106_v30 = vmul.f32 0.7978846, %v104_v28  ;;  %v103_v31 = vmul.f32 0.044715, %v101_v29 }
  0xd6   :  { %325 = vtanh.f32 %v106_v30  ;;  %v105_v32 = vadd.f32 %v103_v31, %v93_v24 }
  0xd8   :  { %v107_v33 = vmul.f32 0.7978846, %v105_v32 }
  0xda   :  { %327 = vtanh.f32 %v107_v33 }
  0xe3   :  { %v326_v34 = vpop.eup %325 }
  0xe4   :  { %v110_v35 = vadd.f32 1.0, %v326_v34 }
  0xe6   :  { %v112_v40 = vmul.f32 %v110_v35, %v96_v37 }
  0xe7   :  { %v328_v36 = vpop.eup %327 }
  0xe8   :  { %v111_v39 = vadd.f32 1.0, %v328_v36 }
  0xea   :  { %v113_v41 = vmul.f32 %v111_v39, %v97_v38 }
  0xec   :  { %v114_v42 = vpack.c.bf16 %v113_v41, %v112_v40 }
  0xee   :  { %306 = vmatmul.mubr.bf16.vlgmr.msra.gmra.mxu1 %v114_v42 }
 0x1ae   :  { %v219_v46 = vpop.f32.mrf.mxu1 }
 0x1af   :  { %v220_v47 = vadd.f32 %v219_v46, %v136_v45 }
 0x1b0   :  { %v307_v48 = vpop.f32.mrf.mxu1 }
 0x1b1   :  { %v267_v49 = vpack.c.bf16 %v220_v47, %v220_v47 }
 0x1b2   :  { %v222_v50 = vpop.f32.mrf.mxu1 }
 0x1b3   :  { %235 = vst.msk [vmem:[#allocation2] sm:$0xf] %vm234_vm2, %v267_v49  ;;  %v223_v51 = vadd.f32 %v222_v50, %v136_v45 }
 0x1b4   :  { %v308_v52 = vpop.f32.mrf.mxu1 }
 0x1b5   :  { %v268_v53 = vpack.c.bf16 %v223_v51, %v223_v51 }
 0x1b7   :  { %236 = vst.msk [vmem:[#allocation2 + $0x4] sm:$0xf] %vm234_vm2, %v268_v53 }
 0x1b8   :  { %340 = shalt.err (!%p337_p4)
}
 0x1b9   :  { %s354_s4 = smov 64   ;;  %s355_s18 = smov 4  }
 0x1ba   :  { %248 = dma.vmem_to_hbm [thread:$0]  %s243_s16, 128, %s433_s5, [#allocation3], %s354_s4, %s354_s4, %s355_s18  }
 0x1bb   :  { %349 = dma.done.wait [#allocation3], 128  }
 0x1bc   :  { %350 = vsyncadd [#allocation3], 4294967168 }
 0x1bd   :  { %252 = vsyncpa [#allocation3], 1 }

</bundles_post_ra>
